<compile_context>
chip_gen: v7x
topology: tpu7x:2x2x1
jax: 0.10.0
libtpu: 0.0.40
codegen_flags: <defaults>
</compile_context>

<pallas_src>
import jax
import jax.numpy as jnp
from jax.experimental import pallas as pl
from jax.experimental.pallas import tpu as pltpu


def _make_partial_sum_kernel(tm, lanes, valid_last_rows, scale):
    """Build the streaming-sum kernel.

    tm, lanes:        static tile shape (rows x lanes) of each grid step.
    valid_last_rows:  static number of valid rows in the last tile, or None if
                      the last tile is full (no masking needed).
    scale:            static multiplier applied to the final sum (1/total when
                      there is no wrapper-side remainder, else 1.0).
    """
    needs_mask = valid_last_rows is not None

    def kernel(x_ref, o_ref, acc_ref):
        i = pl.program_id(0)
        last = pl.num_programs(0) - 1

        # Zero the resident (8, lanes) f32 accumulator at the first step.
        @pl.when(i == 0)
        def _():
            acc_ref[...] = jnp.zeros_like(acc_ref)

        # Cast in-kernel (torch dtype= semantics); input crosses HBM once in
        # its source dtype.
        tile = x_ref[...].astype(jnp.float32)

        if needs_mask:
            # Zero-fill rows past the valid range of the (partial) last tile
            # BEFORE folding, so out-of-bounds garbage never accumulates.
            limit = jnp.where(i == last, valid_last_rows, tm)
            row_idx = jax.lax.broadcasted_iota(jnp.int32, (tm, lanes), 0)
            tile = jnp.where(row_idx < limit, tile, 0.0)

        if tm % 8 == 0:
            # Fold groups of 8 rows onto the (8, lanes) accumulator: the
            # reshape is aligned with (8, 128) tiles and the axis-0 sum lowers
            # to plain VPU vreg adds (no XLU cross-lane work per step).
            acc_ref[...] += tile.reshape(tm // 8, 8, lanes).sum(axis=0)
        else:
            # Tiny-input fallback (single block, rows < 8).
            acc_ref[0:1, :] += jnp.sum(tile, axis=0, keepdims=True)

        # Epilogue: one cross-lane/sublane reduce of a few KB, once.
        @pl.when(i == last)
        def _():
            o_ref[...] = (
                jnp.sum(acc_ref[...], axis=(0, 1), keepdims=True) * scale
            ).astype(jnp.float32)

    return kernel


def reduce_mean_dtype(a, *, target_block_bytes=8 * 1024 * 1024):
    """Full-tensor mean of `a` with float32 accumulation (torch.mean(a, dtype=f32))."""
    total = int(a.size)
    if total == 0:
        # Matches torch.mean on an empty tensor (NaN).
        return jnp.array(jnp.nan, dtype=jnp.float32)

    flat = a.reshape(-1)  # contiguous flatten of all reduced axes: free

    # --- Lane-dense 2-D factorization of the flattened stream. -------------
    # Prefer a lane width that divides `total` so the reshape is copy-less.
    lanes = None
    for cand in (512, 256, 128):
        if total >= cand and total % cand == 0:
            lanes = cand
            break
    if lanes is None:
        if total >= 512:
            lanes = 512
        elif total >= 128:
            lanes = 128
        else:
            lanes = total
    rows = total // lanes
    bulk = rows * lanes

    # --- Row-tile size (target_block_bytes measured in f32 bytes). ---------
    elem_bytes = max(jnp.dtype(a.dtype).itemsize, 4)
    tm_target = max(8, (target_block_bytes // (lanes * elem_bytes)) // 8 * 8)
    if rows >= 8:
        tm = min(tm_target, (rows // 8) * 8)
    else:
        tm = rows  # single tiny block equal to the full row dim
    row_tiles = (rows + tm - 1) // tm

    rows_in_last = rows - (row_tiles - 1) * tm
    valid_last_rows = rows_in_last if rows_in_last != tm else None

    # --- Input view + remainder handling. -----------------------------------
    if bulk == total:
        x2d = flat.reshape(rows, lanes)      # free view
        tail = None
        scale = 1.0 / total                  # kernel emits the mean directly
    else:
        # No lane divisor found: accept one slice copy of the bulk; only the
        # < lanes sub-lane remainder goes to the wrapper.
        x2d = flat[:bulk].reshape(rows, lanes)
        tail = flat[bulk:]
        scale = 1.0                          # kernel emits the bulk sum

    kernel = _make_partial_sum_kernel(tm, lanes, valid_last_rows, scale)

    out = pl.pallas_call(
        kernel,
        out_shape=jax.ShapeDtypeStruct((1, 1), jnp.float32),
        grid_spec=pltpu.PrefetchScalarGridSpec(
            num_scalar_prefetch=0,
            grid=(row_tiles,),
            in_specs=[pl.BlockSpec((tm, lanes), lambda i: (i, 0))],
            out_specs=pl.BlockSpec((1, 1), lambda i: (0, 0)),
            scratch_shapes=[pltpu.VMEM((8, lanes), jnp.float32)],
        ),
        compiler_params=pltpu.CompilerParams(
            dimension_semantics=("arbitrary",),
            vmem_limit_bytes=40 * 1024 * 1024,
        ),
    )(x2d)

    if tail is None:
        return out[0, 0]
    total_sum = out[0, 0] + jnp.sum(tail.astype(jnp.float32))
    return (total_sum / total).astype(jnp.float32)


if __name__ == "__main__":
    key = jax.random.PRNGKey(0)
    key_a, key_b = jax.random.split(key)

    # Primary shape, consistent with the [-1, -1, -1] signature: lane divisor
    # exists (9216 % 512 == 0) so the reshape is copy-less; rows=18 with
    # tm=16 exercises the in-kernel last-tile mask path.
    a = jax.random.normal(key_a, (2, 36, 128), dtype=jnp.float32)
    result = jax.block_until_ready(reduce_mean_dtype(a))
    ref = jnp.mean(a.astype(jnp.float32))
    assert result.dtype == jnp.float32
    assert jnp.allclose(result, ref, rtol=1e-5, atol=1e-6), (result, ref)

    # Misaligned shape (9240 elements): no lane divisor -> bulk + sub-lane
    # remainder path, plus the masked partial last row-tile.
    b = jax.random.normal(key_b, (7, 33, 40), dtype=jnp.float32)
    result_b = jax.block_until_ready(reduce_mean_dtype(b))
    ref_b = jnp.mean(b.astype(jnp.float32))
    assert result_b.dtype == jnp.float32
    assert jnp.allclose(result_b, ref_b, rtol=1e-5, atol=1e-6), (result_b, ref_b)

    print("KERNEL_OK")
</pallas_src>

<mosaic_0001>
module attributes {stable_mosaic.version = 11 : i64} {
  func.func @kernel(%arg0: i32, %arg1: memref<16x512xf32, #tpu.memory_space<vmem>>, %arg2: memref<1x1xf32, #tpu.memory_space<vmem>>, %arg3: memref<8x512xf32, #tpu.memory_space<vmem>>) attributes {dimension_semantics = [#tpu.dimension_semantics<arbitrary>], iteration_bounds = array<i64: 2>, scalar_prefetch = 0 : i64, scratch_operands = 1 : i64, tpu.core_type = #tpu.core_type<tc>, window_params = [{transform_indices = @transform_0, window_bounds = array<i64: 16, 512>}, {pipeline_mode = #tpu.pipeline_mode<synchronous>, transform_indices = @transform_1, window_bounds = array<i64: 1, 1>}]} {
    %c0_i32 = arith.constant 0 : i32
    %0 = arith.cmpi eq, %arg0, %c0_i32 : i32
    %1 = arith.extui %0 : i1 to i32
    %c0_i32_0 = arith.constant 0 : i32
    %2 = arith.cmpi ne, %1, %c0_i32_0 : i32
    scf.if %2 {
      %cst_9 = arith.constant 0.000000e+00 : f32
      %19 = vector.broadcast %cst_9 : f32 to vector<8x512xf32>
      %c0_10 = arith.constant 0 : index
      %c0_11 = arith.constant 0 : index
      %20 = vector.load %arg3[%c0_10, %c0_11] : memref<8x512xf32, #tpu.memory_space<vmem>>, vector<8x512xf32>
      tpu.vector_store %arg3[%c0_10, %c0_11], %19 {strides = array<i32>} : memref<8x512xf32, #tpu.memory_space<vmem>>, vector<8x512xf32>,
    } else {
    }
    %c0 = arith.constant 0 : index
    %c0_1 = arith.constant 0 : index
    %3 = vector.load %arg1[%c0, %c0_1] : memref<16x512xf32, #tpu.memory_space<vmem>>, vector<16x512xf32>
    %c1_i32 = arith.constant 1 : i32
    %4 = arith.cmpi eq, %arg0, %c1_i32 : i32
    %c2_i32 = arith.constant 2 : i32
    %c16_i32 = arith.constant 16 : i32
    %5 = arith.select %4, %c2_i32, %c16_i32 : i32
    %6 = tpu.iota {dimensions = array<i32: 0>} : vector<16x512xi32>
    %7 = vector.broadcast %5 : i32 to vector<16x512xi32>
    %8 = arith.cmpi slt, %6, %7 : vector<16x512xi32>
    %cst = arith.constant 0.000000e+00 : f32
    %9 = vector.broadcast %cst : f32 to vector<16x512xf32>
    %10 = arith.select %8, %3, %9 : vector<16x512xi1>, vector<16x512xf32>
    %c0_2 = arith.constant 0 : index
    %c0_3 = arith.constant 0 : index
    %11 = vector.load %arg3[%c0_2, %c0_3] : memref<8x512xf32, #tpu.memory_space<vmem>>, vector<8x512xf32>
    %12 = vector.shape_cast %10 : vector<16x512xf32> to vector<2x8x512xf32>
    %cst_4 = arith.constant dense<0.000000e+00> : vector<8x512xf32>
    %13 = vector.multi_reduction <add>, %12, %cst_4 [0] : vector<2x8x512xf32> to vector<8x512xf32>
    %14 = arith.addf %11, %13 : vector<8x512xf32>
    %c0_5 = arith.constant 0 : index
    %c0_6 = arith.constant 0 : index
    %15 = vector.load %arg3[%c0_5, %c0_6] : memref<8x512xf32, #tpu.memory_space<vmem>>, vector<8x512xf32>
    tpu.vector_store %arg3[%c0_5, %c0_6], %14 {strides = array<i32>} : memref<8x512xf32, #tpu.memory_space<vmem>>, vector<8x512xf32>,
    %c1_i32_7 = arith.constant 1 : i32
    %16 = arith.cmpi eq, %arg0, %c1_i32_7 : i32
    %17 = arith.extui %16 : i1 to i32
    %c0_i32_8 = arith.constant 0 : i32
    %18 = arith.cmpi ne, %17, %c0_i32_8 : i32
    scf.if %18 {
      %c0_9 = arith.constant 0 : index
      %c0_10 = arith.constant 0 : index
      %19 = vector.load %arg3[%c0_9, %c0_10] : memref<8x512xf32, #tpu.memory_space<vmem>>, vector<8x512xf32>
      %20 = vector.shape_cast %19 : vector<8x512xf32> to vector<1x8x512xf32>
      %cst_11 = arith.constant dense<0.000000e+00> : vector<1xf32>
      %21 = vector.multi_reduction <add>, %20, %cst_11 [1, 2] : vector<1x8x512xf32> to vector<1xf32>
      %22 = vector.shape_cast %21 : vector<1xf32> to vector<1x1x1xf32>
      %23 = vector.extract %22[0, 0, 0] : f32 from vector<1x1x1xf32>
      %24 = vector.broadcast %23 : f32 to vector<1x1xf32>
      %cst_12 = arith.constant 1.08506945E-4 : f32
      %25 = vector.broadcast %cst_12 : f32 to vector<1x1xf32>
      %26 = arith.mulf %24, %25 : vector<1x1xf32>
      %c0_13 = arith.constant 0 : index
      %c0_14 = arith.constant 0 : index
      %27 = vector.load %arg2[%c0_13, %c0_14] : memref<1x1xf32, #tpu.memory_space<vmem>>, vector<1x1xf32>
      tpu.vector_store %arg2[%c0_13, %c0_14], %26 {strides = array<i32>} : memref<1x1xf32, #tpu.memory_space<vmem>>, vector<1x1xf32>,
    } else {
    }
    return
  }
  func.func @transform_0(%arg0: i32) -> (i32, i32) {
    %c0_i32 = arith.constant 0 : i32
    %c0_i32_0 = arith.constant 0 : i32
    return %arg0, %c0_i32 : i32, i32
  }
  func.func @transform_1(%arg0: i32) -> (i32, i32) {
    %c0_i32 = arith.constant 0 : i32
    %c0_i32_0 = arith.constant 0 : i32
    %c0_i32_1 = arith.constant 0 : i32
    return %c0_i32, %c0_i32_0 : i32, i32
  }
}

</mosaic_0001>

<bundles_post_ra>
// kernel: tpu_custom_call.1
= control target key start
LH: loop header
LB: loop body
LE: loop exit
PB: predicated region body
PF: predicated region fallthrough
CT: control target
= control target key end

     0   :  { %6 = vsyncpa [#allocation4], 0  ;;  %s595_s0 = inlined_call_operand.hbm [shape: f32[18,512], index: 0, kind: input, shape index: {}]   ;;  %s596_s1 = inlined_call_operand.hbm [shape: f32[1,1], index: 1, kind: output, shape index: {}]  }
   0x1   :  { %8 = vsyncpa [#allocation4 + $0x1], 0 }
   0x2   :  { %9 = vsyncpa [#allocation5], 0  ;;  %s442_s6 = smov 0   ;;  %s444_s7 = smov 0  }
   0x3   :  { %s446_s8 = smov 0   ;;  %s448_s9 = smov 0  }
   0x4 LB: > { %s461_s10 = sadd.s32 4294967295, %s425_s9   ;;  %s464_s11 = sadd.s32 1, %s425_s9   ;;  %s425_s9 = sphi %s448_s9, %s605_s9   ;;  %s421_s8 = sphi %s446_s8, %s604_s8   ;;  %s417_s7 = sphi %s444_s7, %s603_s7   ;;  %s413_s6 = sphi %s442_s6, %s602_s6  }
   0x5   : > { %s19_s12 = ssub.s32 %s425_s9, %s464_s11  ;;  %s22_s13 = sadd.s32 1, %s421_s8 }
   0x6   : > { %p20_p0 = scmp.eq.s32.totalorder %s19_s12, 0  ;;  %p29_p1 = scmp.ne.s32.totalorder %s421_s8, %s417_s7 }
   0x7   : > { %p30_p2 = scmp.eq.s32.totalorder %s425_s9, 0  ;;  %p35_p3 = scmp.ne.s32.totalorder %s417_s7, %s413_s6 }
   0x8   : > { %s474_s14 = scalar_select %p20_p0, %s421_s8, %s22_s13  }
   0x9   : > { %p31_p4 = por %p30_p2, %p29_p1  ;;  %p36_p5 = scmp.eq.s32.totalorder %s461_s10, 0 }
   0xa   : > { %p267_p7 = scmp.ge.s32.totalorder %s425_s9, 2 }
   0xb   : > { %p477_p6 = por %p36_p5, %p35_p3 }
   0xc   : > { %76 = sbr.rel (%p267_p7) target bundleno = 54 (0x36), region = 16 }
  0x13   : > { %79 = sbr.rel (!%p31_p4) target bundleno = 54 (0x36), region = 20  ;;  %s80_s16 = sand.u32 (%p31_p4), 1, %s421_s8  }
  0x14   : > { %s269_s17 = sshll.u32 (%p31_p4), %s425_s9, 1  ;;  %s268_s18 = sshll.u32 (%p31_p4), %s80_s16, 6 }
  0x15   : > { %s86_s19 = ssub.s32 (%p31_p4), 3, %s269_s17  ;;  %s487_s22 = scalar_lea.sflag (%p31_p4), [#allocation4], %s80_s16 }
  0x16   : > { %p87_p8 = scmp.lt.s32.totalorder (%p31_p4), %s86_s19, 2  ;;  %s84_s23 = scalar_lea.vmem (%p31_p4), [#allocation3], %s268_s18 }
  0x1a   : > { %s607_s19 = smov (!%p87_p8, %s86_s19), 2 }
  0x1b   : > { %s484_s20 = sshll.u32 %s607_s19, 9 }
  0x1c   : > { %s92_s21 = ssub.s32 1024, %s484_s20 }
  0x1d   : > { %93 = vsyncadd %s487_s22, %s92_s21  ;;  %p272_p9 = scmp.ne.s32.totalorder %s484_s20, 0  ;;  %s287_s24 = sshll.u32 %s425_s9, 10 }
  0x1e   : > { %s495_s27 = scalar_lea.hbm %s595_s0, %s287_s24  ;;  %s99_s28 = sshll.u32 %s84_s23, 4  ;;  %s497_s28 = int_to_ptr.vmem [resolvable:$true] %s99_s28 }
  0x1f   : > { %s333_s29 = scalar_lea.hbm %s495_s27, %s484_s20  ;;  %s337_s3 = scalar_lea.hbm %s595_s0, 1536 }
  0x20   : > { %p334_p10 = scmp.ne.s32.totalorder %s495_s27, %s333_s29  ;;  %p338_p13 = scmp.lt.u32.totalorder %s495_s27, %s595_s0 }
  0x21   : > { %p339_p0 = scmp.lt.u32.totalorder %s337_s3, %s333_s29  ;;  %p341_p2 = scmp.lt.u32.totalorder %s333_s29, %s495_s27 }
  0x22   : > { %p335_p11 = pnand %p334_p10, %p272_p9 }
  0x23   : > { %p340_p1 = por %p339_p0, %p338_p13 }
  0x24   : > { %p336_p12 = pneg %p335_p11 }
  0x25   : > { %p342_p3 = por %p341_p2, %p340_p1 }
  0x27   : > { %p343_p4 = pnand %p342_p3, %p336_p12 }
  0x29   : > { %346 = shalt.err (!%p343_p4)
}
  0x2a   : > { %s347_s6 = scalar_lea.vmem %s497_s28, %s484_s20  ;;  %s427_s12 = smov [#allocation3]  }
  0x2b   : > { %p348_p5 = scmp.ne.s32.totalorder %s497_s28, %s347_s6  ;;  %s351_s13 = sshll.u32 %s427_s12, 4  ;;  %s352_s13 = int_to_ptr.vmem [resolvable:$false] %s351_s13 }
  0x2c   : > { %s353_s16 = scalar_lea.vmem %s352_s13, 2048  ;;  %p354_p10 = scmp.lt.s32.totalorder %s497_s28, %s352_s13 }
  0x2d   : > { %p349_p7 = pnand %p348_p5, %p272_p9  ;;  %p355_p11 = scmp.lt.s32.totalorder %s353_s16, %s347_s6 }
  0x2f   : > { %p350_p8 = pneg %p349_p7  ;;  %p356_p13 = por %p355_p11, %p354_p10 }
  0x31   : > { %p357_p0 = pnand %p356_p13, %p350_p8 }
  0x33   : > { %360 = shalt.err (!%p357_p0)
}
  0x34   : > { %s428_s17 = smov 512   ;;  %s429_s18 = smov 32  }
  0x35   : > { %105 = dma.hbm_to_vmem [thread:$0]  (%p272_p9), %s495_s27, %s484_s20, %s497_s28, %s487_s22, %s428_s17, %s428_s17, %s429_s18  }
  0x36 PF: > { %p277_p12 = scmp.ge.s32.totalorder %s425_s9, 1  ;;  %p107_p1 = scmp.lt.s32.totalorder %s425_s9, 3 }
  0x38   : > { %p108_p2 = pnand %p277_p12, %p107_p1 }
  0x39   : > { %s113_s19 = sand.u32 (!%p108_p2), 1, %s417_s7  }
  0x3a   : > { %111 = sbr.rel (%p108_p2) target bundleno = 334 (0x14e), region = 24  ;;  %s278_s21 = sshll.u32 (!%p108_p2), %s113_s19, 6 }
  0x3b   : > { %s114_s23 = scalar_lea.sflag (!%p108_p2), [#allocation4], %s113_s19  ;;  %s117_s24 = scalar_lea.vmem (!%p108_p2), [#allocation3], %s278_s21 }
  0x41   : > { %404 = dma.done.wait (%p477_p6), %s114_s23, 1024  }
  0x42   : > { %406 = vsyncadd (%p477_p6), %s114_s23, 4294966272  ;;  %p279_p9 = scmp.ne.s32.totalorder %s461_s10, 0 }
  0x43   : > { %v430_v0 = vmov (!%p279_p9), 0.0  }
  0x44   : > { %140 = sbr.rel (%p279_p9) target bundleno = 75 (0x4b), region = 32  ;;  %141 = vst [vmem:[#allocation2] sm:$0xff] (!%p279_p9), %v430_v0  ;;  %142 = vst [vmem:[#allocation2 + $0x8] sm:$0xff] (!%p279_p9), %v430_v0 }
  0x45   : > { %143 = vst [vmem:[#allocation2 + $0x10] sm:$0xff] (!%p279_p9), %v430_v0  ;;  %144 = vst [vmem:[#allocation2 + $0x18] sm:$0xff] (!%p279_p9), %v430_v0 }
  0x4b PF: > { %p153_p3 = scmp.eq.s32.totalorder %s461_s10, 1  ;;  %v155_v1 = vlaneseq  ;;  %v145_v2 = vld [vmem:[%s117_s24] sm:$0xff]  ;;  %v146_v5 = vld [vmem:[%s117_s24 + $0x8] sm:$0xff]  ;;  %v147_v6 = vld [vmem:[%s117_s24 + $0x10] sm:$0xff]  ;;  %p280_p6 = scmp.ne.s32.totalorder %s461_s10, 1 }
  0x4c   : > { %v149_v4 = vld [vmem:[%s117_s24 + $0x20] sm:$0xff]  ;;  %v150_v9 = vld [vmem:[%s117_s24 + $0x28] sm:$0xff]  ;;  %v151_v10 = vld [vmem:[%s117_s24 + $0x30] sm:$0xff]  ;;  %vm206_vm2 = vcmask (!%p280_p6), 0  }
  0x4d   : > { %s154_s9 = scalar_select %p153_p3, 2, 16  ;;  %v156_v3 = vshrl.u32 %v155_v1, 7  ;;  %v148_v11 = vld [vmem:[%s117_s24 + $0x18] sm:$0xff]  ;;  %v169_v16 = vld [vmem:[#allocation2] sm:$0xff]  ;;  %v170_v21 = vld [vmem:[#allocation2 + $0x8] sm:$0xff] }
  0x4e   : > { %v152_v13 = vld [vmem:[%s117_s24 + $0x38] sm:$0xff]  ;;  %v171_v23 = vld [vmem:[#allocation2 + $0x10] sm:$0xff] }
  0x4f   : > { %v157_v7 = vadd.s32 8, %v156_v3  ;;  %v158_v8 = vstv %s154_s9  ;;  %v172_v29 = vld [vmem:[#allocation2 + $0x18] sm:$0xff] }
  0x50   : > { %vm535_vm0 = vcmp.lt.s32.totalorder %v156_v3, %v158_v8 }
  0x51   : > { %vm539_vm1 = vcmp.lt.s32.totalorder %v157_v7, %v158_v8  ;;  %v161_v15 = vsel %vm535_vm0, %v145_v2, 0.0  ;;  %v162_v17 = vsel %vm535_vm0, %v146_v5, 0.0  ;;  %v163_v18 = vsel %vm535_vm0, %v147_v6, 0.0 }
  0x52   : > { %v165_v19 = vsel %vm539_vm1, %v149_v4, 0.0  ;;  %v166_v20 = vsel %vm539_vm1, %v150_v9, 0.0  ;;  %v167_v22 = vsel %vm539_vm1, %v151_v10, 0.0  ;;  %v164_v24 = vsel %vm535_vm0, %v148_v11, 0.0  ;;  %187 = sbr.rel (%p280_p6) target bundleno = 309 (0x135), region = 36 }
  0x53   : > { %v173_v25 = vadd.f32 %v165_v19, %v161_v15  ;;  %v174_v26 = vadd.f32 %v166_v20, %v162_v17  ;;  %v175_v27 = vadd.f32 %v167_v22, %v163_v18  ;;  %v168_v28 = vsel %vm539_vm1, %v152_v13, 0.0 }
  0x54   : > { %v176_v30 = vadd.f32 %v168_v28, %v164_v24 }
  0x55   : > { %v177_v31 = vadd.f32 %v173_v25, %v169_v16  ;;  %v178_v32 = vadd.f32 %v174_v26, %v170_v21  ;;  %v179_v33 = vadd.f32 %v175_v27, %v171_v23 }
  0x56   : > { %v180_v34 = vadd.f32 %v176_v30, %v172_v29 }
  0x57   : > { %181 = vst [vmem:[#allocation2] sm:$0xff] %v177_v31  ;;  %182 = vst [vmem:[#allocation2 + $0x8] sm:$0xff] %v178_v32 }
  0x58   : > { %183 = vst [vmem:[#allocation2 + $0x10] sm:$0xff] %v179_v33  ;;  %184 = vst [vmem:[#allocation2 + $0x18] sm:$0xff] %v180_v34 }
  0x5e   : > { %v188_v35 = vld [vmem:[#allocation2] sm:$0xff]  ;;  %v189_v36 = vld [vmem:[#allocation2 + $0x8] sm:$0xff] }
  0x5f   : > { %v190_v37 = vld [vmem:[#allocation2 + $0x10] sm:$0xff]  ;;  %v192_v38 = vadd.f32 %v189_v36, %v188_v35  ;;  %v191_v39 = vld [vmem:[#allocation2 + $0x18] sm:$0xff] }
  0x61   : > { %v193_v40 = vadd.f32 %v192_v38, %v190_v37 }
  0x63   : > { %v194_v41 = vadd.f32 %v193_v40, %v191_v39 }
  0x65   : > { %195 = vadd.xlane.f32.xlu0 %v194_v41 }
  0xf2   : > { %v196_v42 = vpop.xlane.xlu0 %195 }
  0xf3   : > { %v197_v43 = vrot.slane %v196_v42, 4 }
  0xf5   : > { %v198_v44 = vadd.f32 %v197_v43, %v196_v42 }
  0xf7   : > { %v199_v45 = vrot.slane %v198_v44, 2 }
  0xf9   : > { %v200_v46 = vadd.f32 %v199_v45, %v198_v44 }
  0xfb   : > { %v201_v47 = vrot.slane %v200_v46, 1 }
  0xfd   : > { %v202_v48 = vadd.f32 %v201_v47, %v200_v46 }
  0xff   : > { %288 = vpush %v202_v48 }
 0x130   : > { %s289_s15 = spop %288 }
 0x131   : > { %v204_v49 = vstv %s289_s15 }
 0x132   : > { %v205_v50 = vmul.f32 0.000108506945, %v204_v49 }
 0x134   : > { %207 = vst.msk [vmem:[#allocation6] sm:$0x1] %vm206_vm2, %v205_v50 }
 0x135 PF: > { %s431_s20 = smov [#allocation6]  }
 0x136   : > { %s215_s22 = sshll.u32 %s431_s20, 4  ;;  %s216_s22 = int_to_ptr.vmem [resolvable:$true] %s215_s22 }
 0x137   : > { %s361_s25 = scalar_lea.vmem %s216_s22, 16  ;;  %s367_s26 = scalar_lea.vmem %s216_s22, 32 }
 0x138   : > { %p362_p4 = scmp.ne.s32.totalorder %s216_s22, %s361_s25  ;;  %p368_p8 = scmp.lt.s32.totalorder %s216_s22, %s216_s22 }
 0x139   : > { %p369_p10 = scmp.lt.s32.totalorder %s367_s26, %s361_s25 }
 0x13a   : > { %p363_p5 = pnand %p362_p4, %p153_p3 }
 0x13b   : > { %p370_p11 = por %p369_p10, %p368_p8 }
 0x13c   : > { %p364_p7 = pneg %p363_p5 }
 0x13e   : > { %p371_p13 = pnand %p370_p11, %p364_p7 }
 0x140   : > { %374 = shalt.err (!%p371_p13)
}
 0x141   : > { %s375_s29 = scalar_lea.hbm %s596_s1, 16 }
 0x142   : > { %p376_p0 = scmp.ne.s32.totalorder %s596_s1, %s375_s29  ;;  %p381_p2 = scmp.lt.u32.totalorder %s375_s29, %s596_s1 }
 0x144   : > { %p377_p12 = pnand %p376_p0, %p153_p3 }
 0x146   : > { %p378_p1 = pneg %p377_p12 }
 0x148   : > { %p383_p9 = pnand %p381_p2, %p378_p1 }
 0x14a   : > { %386 = shalt.err (!%p383_p9)
}
 0x14b   : > { %292 = dma.vmem_to_hbm [thread:$0]  (%p153_p3), %s216_s22, 16, %s596_s1, [#allocation5]  }
 0x14c   : > { %408 = dma.done.wait (%p153_p3), [#allocation5], 16  }
 0x14d   : > { %410 = vsyncadd (%p153_p3), [#allocation5], 4294967280 }
 0x14e PF: > { %p12_p6 = scmp.ge.s32.totalorder %s464_s11, 4   ;;  %s602_s6 = smov %s417_s7 }
 0x14f   : > { %s603_s7 = smov %s421_s8  ;;  %s604_s8 = smov %s474_s14 }
 0x150   : > { %s605_s9 = smov %s464_s11  ;;  %14 = sbr.rel (!%p12_p6) target bundleno = 4 (0x4), region = 69 }
 0x157   :  { %228 = vsyncpa [#allocation4], 1 }
 0x158   :  { %230 = vsyncpa [#allocation4 + $0x1], 1 }
 0x159   :  { %231 = vsyncpa [#allocation5], 1 }
 0x15a   :  { %233 = vsyncpa [#allocation5 + $0x1], 1 }

</bundles_post_ra>
